<compile_context>
chip_gen: v5e
topology: v5e:2x2
jax: 0.10.0
libtpu: 0.0.40
codegen_flags: <defaults>
</compile_context>

<pallas_src>
import functools

import jax
import jax.numpy as jnp
from jax import lax
from jax.experimental import pallas as pl
from jax.experimental.pallas import tpu as pltpu


# ----------------------------------------------------------------------------
# Fused Pallas kernel: whole forward pass
# ----------------------------------------------------------------------------
def _fused_resgated_kernel(
    h_feat_ref, e_feat_ref, src_oh_ref, dst_oh_ref,
    emb_h_w_ref, emb_h_b_ref, emb_e_w_ref, emb_e_b_ref,
    w_node_ref, b_node_ref, w_c_ref, b_c_ref, bn_ref,
    mlp_w_ref, mlp_b_ref,
    out_ref,
    *, n_layers, hidden,
):
    H = hidden
    f32 = jnp.float32

    src_oh = src_oh_ref[...]   # [E, N] one-hot (rows = edges, col = source node)
    dst_oh = dst_oh_ref[...]   # [E, N] one-hot (rows = edges, col = dest   node)

    # --- input embeddings -----------------------------------------------------
    # node embedding: one MXU matmul
    h = jnp.dot(h_feat_ref[...], emb_h_w_ref[...],
                preferred_element_type=f32) + emb_h_b_ref[...]          # [N, H]
    # edge embedding: [E,1] @ [1,H] is a degenerate outer product -> VPU broadcast
    e = e_feat_ref[...] * emb_e_w_ref[...] + emb_e_b_ref[...]           # [E, H]

    # --- gated GCN layers (statically unrolled; L is small) --------------------
    for l in range(n_layers):
        w_node = w_node_ref[l]   # [H, 4H]  = [A | B | D | E]
        b_node = b_node_ref[l]   # [1, 4H]
        w_c = w_c_ref[l]         # [H, H]
        b_c = b_c_ref[l]         # [1, H]
        bn = bn_ref[l]           # [1, 4H]  = [scale_h | shift_h | scale_e | shift_e]

        # One lane-dense (4H = 128) matmul for all four node-side linears.
        node_lin = jnp.dot(h, w_node, preferred_element_type=f32) + b_node  # [N, 4H]
        Ah = node_lin[:, 0 * H:1 * H]
        Ce = jnp.dot(e, w_c, preferred_element_type=f32) + b_c              # [E, H]

        # Edge gathers via one-hot matmuls on the full 128-lane slab.
        src_g = jnp.dot(src_oh, node_lin, preferred_element_type=f32)       # [E, 4H]
        dst_g = jnp.dot(dst_oh, node_lin, preferred_element_type=f32)       # [E, 4H]
        Bh_src = src_g[:, 1 * H:2 * H]
        Dh_src = src_g[:, 2 * H:3 * H]
        Eh_dst = dst_g[:, 3 * H:4 * H]

        e_new = Ce + Dh_src + Eh_dst                                         # [E, H]
        sigma = jax.nn.sigmoid(e_new)
        gated = sigma * Bh_src                                               # [E, H]

        # Scatter-sum onto destination nodes: contract the E axis of dst_oh
        # (no transposed one-hot input needed).
        dn = (((0,), (0,)), ((), ()))
        num = lax.dot_general(dst_oh, gated, dn, preferred_element_type=f32)  # [N, H]
        den = lax.dot_general(dst_oh, sigma, dn, preferred_element_type=f32)  # [N, H]
        h_new = Ah + num * pl.reciprocal(den + 1e-6, approx=True)

        # BatchNorm1d (eval, folded into scale/shift) then residual add.
        scale_h = bn[:, 0 * H:1 * H]
        shift_h = bn[:, 1 * H:2 * H]
        scale_e = bn[:, 2 * H:3 * H]
        shift_e = bn[:, 3 * H:4 * H]
        h = h + (h_new * scale_h + shift_h)
        e = e + (e_new * scale_e + shift_e)
        # dropout: eval mode => identity

    # --- classifier head --------------------------------------------------------
    out_ref[...] = (
        jnp.dot(h, mlp_w_ref[...], preferred_element_type=f32) + mlp_b_ref[...]
    ).astype(out_ref.dtype)


def _full_spec(shape):
    zeros = (0,) * len(shape)
    return pl.BlockSpec(shape, lambda i, _z=zeros: _z)


def resgated_gcn_net_forward(h_feat, e_feat, edge_index, params, num_nodes):
    """Full ResGatedGCNNet forward as a single fused Pallas call."""
    src, dst = edge_index[0], edge_index[1]
    src_oh = jax.nn.one_hot(src, num_nodes, dtype=jnp.float32)   # [E, N]
    dst_oh = jax.nn.one_hot(dst, num_nodes, dtype=jnp.float32)   # [E, N]

    n_layers = params["w_node"].shape[0]
    hidden = params["w_node"].shape[1]
    n_classes = params["mlp_w"].shape[1]
    N = h_feat.shape[0]

    inputs = [
        h_feat, e_feat, src_oh, dst_oh,
        params["emb_h_w"], params["emb_h_b"], params["emb_e_w"], params["emb_e_b"],
        params["w_node"], params["b_node"], params["w_c"], params["b_c"], params["bn"],
        params["mlp_w"], params["mlp_b"],
    ]

    kernel = functools.partial(
        _fused_resgated_kernel, n_layers=n_layers, hidden=hidden
    )
    return pl.pallas_call(
        kernel,
        grid=(1,),
        out_shape=jax.ShapeDtypeStruct((N, n_classes), jnp.float32),
        in_specs=[_full_spec(x.shape) for x in inputs],
        out_specs=_full_spec((N, n_classes)),
        compiler_params=pltpu.CompilerParams(dimension_semantics=("arbitrary",)),
    )(*inputs)


# ----------------------------------------------------------------------------
# Parameter construction (deterministic, synthetic; fused/stacked layout)
# ----------------------------------------------------------------------------
def _make_linear(key, in_dim, out_dim, scale=0.1):
    kw, kb = jax.random.split(key)
    w = (scale * jax.random.normal(kw, (in_dim, out_dim))).astype(jnp.float32)
    b = (scale * jax.random.normal(kb, (1, out_dim))).astype(jnp.float32)
    return w, b


def _fold_bn(gamma, beta, running_mean, running_var, eps=1e-5):
    scale = gamma / jnp.sqrt(running_var + eps)
    shift = beta - running_mean * scale
    return scale.reshape(1, -1), shift.reshape(1, -1)


def init_params(key, in_dim, hidden, n_classes, n_layers):
    keys = jax.random.split(key, 3 + 5 * n_layers)
    p = {}
    p["emb_h_w"], p["emb_h_b"] = _make_linear(keys[0], in_dim, hidden)
    p["emb_e_w"], p["emb_e_b"] = _make_linear(keys[1], 1, hidden)
    p["mlp_w"], p["mlp_b"] = _make_linear(keys[2], hidden, n_classes)

    w_node, b_node, w_c, b_c, bn = [], [], [], [], []
    for li in range(n_layers):
        lk = keys[3 + 5 * li: 3 + 5 * (li + 1)]
        ws, bs = [], []
        for k in lk[:4]:                         # A, B, D, E  (node-side linears)
            w, b = _make_linear(k, hidden, hidden)
            ws.append(w)
            bs.append(b)
        w_node.append(jnp.concatenate(ws, axis=1))   # [H, 4H]
        b_node.append(jnp.concatenate(bs, axis=1))   # [1, 4H]
        wc, bc = _make_linear(lk[4], hidden, hidden)  # C  (edge-side linear)
        w_c.append(wc)
        b_c.append(bc)
        # BatchNorm1d eval params: gamma=1, beta=0, running_mean=0, running_var=1.
        ones = jnp.ones((hidden,), jnp.float32)
        zeros = jnp.zeros((hidden,), jnp.float32)
        sh, th = _fold_bn(ones, zeros, zeros, ones)
        se, te = _fold_bn(ones, zeros, zeros, ones)
        bn.append(jnp.concatenate([sh, th, se, te], axis=1))   # [1, 4H]

    p["w_node"] = jnp.stack(w_node)   # [L, H, 4H]
    p["b_node"] = jnp.stack(b_node)   # [L, 1, 4H]
    p["w_c"] = jnp.stack(w_c)         # [L, H, H]
    p["b_c"] = jnp.stack(b_c)         # [L, 1, H]
    p["bn"] = jnp.stack(bn)           # [L, 1, 4H]
    return p


# ----------------------------------------------------------------------------
if __name__ == "__main__":
    key = jax.random.PRNGKey(0)
    k_h, k_e, k_p = jax.random.split(key, 3)

    N_NODES = 16
    IN_DIM = 8
    HIDDEN = 32      # 4*HIDDEN = 128 lanes for the fused node matmul
    N_CLASSES = 8
    N_LAYERS = 2

    # Deterministic small graph: node i has edges i -> (i+1)%N and i -> (i+3)%N.
    src = jnp.concatenate([jnp.arange(N_NODES), jnp.arange(N_NODES)])
    dst = jnp.concatenate([(jnp.arange(N_NODES) + 1) % N_NODES,
                           (jnp.arange(N_NODES) + 3) % N_NODES])
    edge_index = jnp.stack([src, dst]).astype(jnp.int32)          # [2, E], E = 32
    E_EDGES = edge_index.shape[1]

    h_feat = jax.random.normal(k_h, (N_NODES, IN_DIM), dtype=jnp.float32)
    e_feat = jax.random.normal(k_e, (E_EDGES, 1), dtype=jnp.float32)

    params = init_params(k_p, IN_DIM, HIDDEN, N_CLASSES, N_LAYERS)

    fwd = jax.jit(functools.partial(resgated_gcn_net_forward, num_nodes=N_NODES))
    out = fwd(h_feat, e_feat, edge_index, params)
    jax.block_until_ready(out)

    assert out.shape == (N_NODES, N_CLASSES)
    assert jnp.all(jnp.isfinite(out))
    print("KERNEL_OK")
</pallas_src>

<mosaic_0001>
module attributes {stable_mosaic.version = 11 : i64} {
  func.func @_fused_resgated_kernel(%arg0: i32, %arg1: memref<16x8xf32, #tpu.memory_space<vmem>>, %arg2: memref<32x1xf32, #tpu.memory_space<vmem>>, %arg3: memref<32x16xf32, #tpu.memory_space<vmem>>, %arg4: memref<32x16xf32, #tpu.memory_space<vmem>>, %arg5: memref<8x32xf32, #tpu.memory_space<vmem>>, %arg6: memref<1x32xf32, #tpu.memory_space<vmem>>, %arg7: memref<1x32xf32, #tpu.memory_space<vmem>>, %arg8: memref<1x32xf32, #tpu.memory_space<vmem>>, %arg9: memref<2x32x128xf32, #tpu.memory_space<vmem>>, %arg10: memref<2x1x128xf32, #tpu.memory_space<vmem>>, %arg11: memref<2x32x32xf32, #tpu.memory_space<vmem>>, %arg12: memref<2x1x32xf32, #tpu.memory_space<vmem>>, %arg13: memref<2x1x128xf32, #tpu.memory_space<vmem>>, %arg14: memref<32x8xf32, #tpu.memory_space<vmem>>, %arg15: memref<1x8xf32, #tpu.memory_space<vmem>>, %arg16: memref<16x8xf32, #tpu.memory_space<vmem>>) attributes {dimension_semantics = [#tpu.dimension_semantics<arbitrary>], iteration_bounds = array<i64: 1>, scalar_prefetch = 0 : i64, scratch_operands = 0 : i64, tpu.core_type = #tpu.core_type<tc>, window_params = [{pipeline_mode = #tpu.pipeline_mode<synchronous>, transform_indices = @transform_0, window_bounds = array<i64: 16, 8>}, {pipeline_mode = #tpu.pipeline_mode<synchronous>, transform_indices = @transform_1, window_bounds = array<i64: 32, 1>}, {pipeline_mode = #tpu.pipeline_mode<synchronous>, transform_indices = @transform_2, window_bounds = array<i64: 32, 16>}, {pipeline_mode = #tpu.pipeline_mode<synchronous>, transform_indices = @transform_3, window_bounds = array<i64: 32, 16>}, {pipeline_mode = #tpu.pipeline_mode<synchronous>, transform_indices = @transform_4, window_bounds = array<i64: 8, 32>}, {pipeline_mode = #tpu.pipeline_mode<synchronous>, transform_indices = @transform_5, window_bounds = array<i64: 1, 32>}, {pipeline_mode = #tpu.pipeline_mode<synchronous>, transform_indices = @transform_6, window_bounds = array<i64: 1, 32>}, {pipeline_mode = #tpu.pipeline_mode<synchronous>, transform_indices = @transform_7, window_bounds = array<i64: 1, 32>}, {pipeline_mode = #tpu.pipeline_mode<synchronous>, transform_indices = @transform_8, window_bounds = array<i64: 2, 32, 128>}, {pipeline_mode = #tpu.pipeline_mode<synchronous>, transform_indices = @transform_9, window_bounds = array<i64: 2, 1, 128>}, {pipeline_mode = #tpu.pipeline_mode<synchronous>, transform_indices = @transform_10, window_bounds = array<i64: 2, 32, 32>}, {pipeline_mode = #tpu.pipeline_mode<synchronous>, transform_indices = @transform_11, window_bounds = array<i64: 2, 1, 32>}, {pipeline_mode = #tpu.pipeline_mode<synchronous>, transform_indices = @transform_12, window_bounds = array<i64: 2, 1, 128>}, {pipeline_mode = #tpu.pipeline_mode<synchronous>, transform_indices = @transform_13, window_bounds = array<i64: 32, 8>}, {pipeline_mode = #tpu.pipeline_mode<synchronous>, transform_indices = @transform_14, window_bounds = array<i64: 1, 8>}, {pipeline_mode = #tpu.pipeline_mode<synchronous>, transform_indices = @transform_15, window_bounds = array<i64: 16, 8>}]} {
    %c0 = arith.constant 0 : index
    %c0_0 = arith.constant 0 : index
    %0 = vector.load %arg3[%c0, %c0_0] : memref<32x16xf32, #tpu.memory_space<vmem>>, vector<32x16xf32>
    %c0_1 = arith.constant 0 : index
    %c0_2 = arith.constant 0 : index
    %1 = vector.load %arg4[%c0_1, %c0_2] : memref<32x16xf32, #tpu.memory_space<vmem>>, vector<32x16xf32>
    %c0_3 = arith.constant 0 : index
    %c0_4 = arith.constant 0 : index
    %2 = vector.load %arg1[%c0_3, %c0_4] : memref<16x8xf32, #tpu.memory_space<vmem>>, vector<16x8xf32>
    %c0_5 = arith.constant 0 : index
    %c0_6 = arith.constant 0 : index
    %3 = vector.load %arg5[%c0_5, %c0_6] : memref<8x32xf32, #tpu.memory_space<vmem>>, vector<8x32xf32>
    %cst = arith.constant dense<0.000000e+00> : vector<16x32xf32>
    %4 = tpu.matmul %2, %3, %cst {dimension_numbers = #tpu.dot_dimension_numbers<[1], [0], [0], [1], [0, 0, 1, 1], [], []>} : vector<16x8xf32>, vector<8x32xf32>, vector<16x32xf32> -> vector<16x32xf32>
    %c0_7 = arith.constant 0 : index
    %c0_8 = arith.constant 0 : index
    %5 = vector.load %arg6[%c0_7, %c0_8] : memref<1x32xf32, #tpu.memory_space<vmem>>, vector<1x32xf32>
    %6 = vector.broadcast %5 : vector<1x32xf32> to vector<16x32xf32>
    %7 = arith.addf %4, %6 : vector<16x32xf32>
    %c0_9 = arith.constant 0 : index
    %c0_10 = arith.constant 0 : index
    %8 = vector.load %arg2[%c0_9, %c0_10] : memref<32x1xf32, #tpu.memory_space<vmem>>, vector<32x1xf32>
    %c0_11 = arith.constant 0 : index
    %c0_12 = arith.constant 0 : index
    %9 = vector.load %arg7[%c0_11, %c0_12] : memref<1x32xf32, #tpu.memory_space<vmem>>, vector<1x32xf32>
    %10 = vector.broadcast %8 : vector<32x1xf32> to vector<32x32xf32>
    %11 = vector.broadcast %9 : vector<1x32xf32> to vector<32x32xf32>
    %12 = arith.mulf %10, %11 : vector<32x32xf32>
    %c0_13 = arith.constant 0 : index
    %c0_14 = arith.constant 0 : index
    %13 = vector.load %arg8[%c0_13, %c0_14] : memref<1x32xf32, #tpu.memory_space<vmem>>, vector<1x32xf32>
    %14 = vector.broadcast %13 : vector<1x32xf32> to vector<32x32xf32>
    %15 = arith.addf %12, %14 : vector<32x32xf32>
    %c0_15 = arith.constant 0 : index
    %c0_16 = arith.constant 0 : index
    %c0_17 = arith.constant 0 : index
    %16 = vector.load %arg9[%c0_15, %c0_16, %c0_17] : memref<2x32x128xf32, #tpu.memory_space<vmem>>, vector<1x32x128xf32>
    %17 = vector.shape_cast %16 : vector<1x32x128xf32> to vector<32x128xf32>
    %c0_18 = arith.constant 0 : index
    %c0_19 = arith.constant 0 : index
    %c0_20 = arith.constant 0 : index
    %18 = vector.load %arg10[%c0_18, %c0_19, %c0_20] : memref<2x1x128xf32, #tpu.memory_space<vmem>>, vector<1x1x128xf32>
    %19 = vector.shape_cast %18 : vector<1x1x128xf32> to vector<1x128xf32>
    %c0_21 = arith.constant 0 : index
    %c0_22 = arith.constant 0 : index
    %c0_23 = arith.constant 0 : index
    %20 = vector.load %arg11[%c0_21, %c0_22, %c0_23] : memref<2x32x32xf32, #tpu.memory_space<vmem>>, vector<1x32x32xf32>
    %21 = vector.shape_cast %20 : vector<1x32x32xf32> to vector<32x32xf32>
    %c0_24 = arith.constant 0 : index
    %c0_25 = arith.constant 0 : index
    %c0_26 = arith.constant 0 : index
    %22 = vector.load %arg12[%c0_24, %c0_25, %c0_26] : memref<2x1x32xf32, #tpu.memory_space<vmem>>, vector<1x1x32xf32>
    %23 = vector.shape_cast %22 : vector<1x1x32xf32> to vector<1x32xf32>
    %c0_27 = arith.constant 0 : index
    %c0_28 = arith.constant 0 : index
    %c0_29 = arith.constant 0 : index
    %24 = vector.load %arg13[%c0_27, %c0_28, %c0_29] : memref<2x1x128xf32, #tpu.memory_space<vmem>>, vector<1x1x128xf32>
    %25 = vector.shape_cast %24 : vector<1x1x128xf32> to vector<1x128xf32>
    %cst_30 = arith.constant dense<0.000000e+00> : vector<16x128xf32>
    %26 = tpu.matmul %7, %17, %cst_30 {dimension_numbers = #tpu.dot_dimension_numbers<[1], [0], [0], [1], [0, 0, 1, 1], [], []>} : vector<16x32xf32>, vector<32x128xf32>, vector<16x128xf32> -> vector<16x128xf32>
    %27 = vector.broadcast %19 : vector<1x128xf32> to vector<16x128xf32>
    %28 = arith.addf %26, %27 : vector<16x128xf32>
    %29 = vector.extract_strided_slice %28 {offsets = [0, 0], sizes = [16, 32], strides = [1, 1]} : vector<16x128xf32> to vector<16x32xf32>
    %cst_31 = arith.constant dense<0.000000e+00> : vector<32x32xf32>
    %30 = tpu.matmul %15, %21, %cst_31 {dimension_numbers = #tpu.dot_dimension_numbers<[1], [0], [0], [1], [0, 0, 1, 1], [], []>} : vector<32x32xf32>, vector<32x32xf32>, vector<32x32xf32> -> vector<32x32xf32>
    %31 = vector.broadcast %23 : vector<1x32xf32> to vector<32x32xf32>
    %32 = arith.addf %30, %31 : vector<32x32xf32>
    %cst_32 = arith.constant dense<0.000000e+00> : vector<32x128xf32>
    %33 = tpu.matmul %0, %28, %cst_32 {dimension_numbers = #tpu.dot_dimension_numbers<[1], [0], [0], [1], [0, 0, 1, 1], [], []>} : vector<32x16xf32>, vector<16x128xf32>, vector<32x128xf32> -> vector<32x128xf32>
    %cst_33 = arith.constant dense<0.000000e+00> : vector<32x128xf32>
    %34 = tpu.matmul %1, %28, %cst_33 {dimension_numbers = #tpu.dot_dimension_numbers<[1], [0], [0], [1], [0, 0, 1, 1], [], []>} : vector<32x16xf32>, vector<16x128xf32>, vector<32x128xf32> -> vector<32x128xf32>
    %35 = vector.extract_strided_slice %33 {offsets = [0, 32], sizes = [32, 32], strides = [1, 1]} : vector<32x128xf32> to vector<32x32xf32>
    %36 = vector.extract_strided_slice %33 {offsets = [0, 64], sizes = [32, 32], strides = [1, 1]} : vector<32x128xf32> to vector<32x32xf32>
    %37 = vector.extract_strided_slice %34 {offsets = [0, 96], sizes = [32, 32], strides = [1, 1]} : vector<32x128xf32> to vector<32x32xf32>
    %38 = arith.addf %32, %36 : vector<32x32xf32>
    %39 = arith.addf %38, %37 : vector<32x32xf32>
    %40 = arith.negf %39 : vector<32x32xf32>
    %41 = math.exp %40 : vector<32x32xf32>
    %cst_34 = arith.constant 1.000000e+00 : f32
    %42 = vector.broadcast %cst_34 : f32 to vector<32x32xf32>
    %43 = arith.addf %42, %41 : vector<32x32xf32>
    %44 = arith.divf %42, %43 : vector<32x32xf32>
    %45 = arith.mulf %44, %35 : vector<32x32xf32>
    %cst_35 = arith.constant dense<0.000000e+00> : vector<16x32xf32>
    %46 = tpu.matmul %1, %45, %cst_35 {dimension_numbers = #tpu.dot_dimension_numbers<[0], [0], [1], [1], [0, 1, 1, 1], [], []>} : vector<32x16xf32>, vector<32x32xf32>, vector<16x32xf32> -> vector<16x32xf32>
    %cst_36 = arith.constant dense<0.000000e+00> : vector<16x32xf32>
    %47 = tpu.matmul %1, %44, %cst_36 {dimension_numbers = #tpu.dot_dimension_numbers<[0], [0], [1], [1], [0, 1, 1, 1], [], []>} : vector<32x16xf32>, vector<32x32xf32>, vector<16x32xf32> -> vector<16x32xf32>
    %cst_37 = arith.constant 9.99999997E-7 : f32
    %48 = vector.broadcast %cst_37 : f32 to vector<16x32xf32>
    %49 = arith.addf %47, %48 : vector<16x32xf32>
    %50 = tpu.reciprocal %49 {approx = true} : vector<16x32xf32> -> vector<16x32xf32>
    %51 = arith.mulf %46, %50 : vector<16x32xf32>
    %52 = arith.addf %29, %51 : vector<16x32xf32>
    %53 = vector.extract_strided_slice %25 {offsets = [0, 0], sizes = [1, 32], strides = [1, 1]} : vector<1x128xf32> to vector<1x32xf32>
    %54 = vector.extract_strided_slice %25 {offsets = [0, 32], sizes = [1, 32], strides = [1, 1]} : vector<1x128xf32> to vector<1x32xf32>
    %55 = vector.extract_strided_slice %25 {offsets = [0, 64], sizes = [1, 32], strides = [1, 1]} : vector<1x128xf32> to vector<1x32xf32>
    %56 = vector.extract_strided_slice %25 {offsets = [0, 96], sizes = [1, 32], strides = [1, 1]} : vector<1x128xf32> to vector<1x32xf32>
    %57 = vector.broadcast %53 : vector<1x32xf32> to vector<16x32xf32>
    %58 = arith.mulf %52, %57 : vector<16x32xf32>
    %59 = vector.broadcast %54 : vector<1x32xf32> to vector<16x32xf32>
    %60 = arith.addf %58, %59 : vector<16x32xf32>
    %61 = arith.addf %7, %60 : vector<16x32xf32>
    %62 = vector.broadcast %55 : vector<1x32xf32> to vector<32x32xf32>
    %63 = arith.mulf %39, %62 : vector<32x32xf32>
    %64 = vector.broadcast %56 : vector<1x32xf32> to vector<32x32xf32>
    %65 = arith.addf %63, %64 : vector<32x32xf32>
    %66 = arith.addf %15, %65 : vector<32x32xf32>
    %c1 = arith.constant 1 : index
    %c0_38 = arith.constant 0 : index
    %c0_39 = arith.constant 0 : index
    %67 = vector.load %arg9[%c1, %c0_38, %c0_39] : memref<2x32x128xf32, #tpu.memory_space<vmem>>, vector<1x32x128xf32>
    %68 = vector.shape_cast %67 : vector<1x32x128xf32> to vector<32x128xf32>
    %c1_40 = arith.constant 1 : index
    %c0_41 = arith.constant 0 : index
    %c0_42 = arith.constant 0 : index
    %69 = vector.load %arg10[%c1_40, %c0_41, %c0_42] : memref<2x1x128xf32, #tpu.memory_space<vmem>>, vector<1x1x128xf32>
    %70 = vector.shape_cast %69 : vector<1x1x128xf32> to vector<1x128xf32>
    %c1_43 = arith.constant 1 : index
    %c0_44 = arith.constant 0 : index
    %c0_45 = arith.constant 0 : index
    %71 = vector.load %arg11[%c1_43, %c0_44, %c0_45] : memref<2x32x32xf32, #tpu.memory_space<vmem>>, vector<1x32x32xf32>
    %72 = vector.shape_cast %71 : vector<1x32x32xf32> to vector<32x32xf32>
    %c1_46 = arith.constant 1 : index
    %c0_47 = arith.constant 0 : index
    %c0_48 = arith.constant 0 : index
    %73 = vector.load %arg12[%c1_46, %c0_47, %c0_48] : memref<2x1x32xf32, #tpu.memory_space<vmem>>, vector<1x1x32xf32>
    %74 = vector.shape_cast %73 : vector<1x1x32xf32> to vector<1x32xf32>
    %c1_49 = arith.constant 1 : index
    %c0_50 = arith.constant 0 : index
    %c0_51 = arith.constant 0 : index
    %75 = vector.load %arg13[%c1_49, %c0_50, %c0_51] : memref<2x1x128xf32, #tpu.memory_space<vmem>>, vector<1x1x128xf32>
    %76 = vector.shape_cast %75 : vector<1x1x128xf32> to vector<1x128xf32>
    %cst_52 = arith.constant dense<0.000000e+00> : vector<16x128xf32>
    %77 = tpu.matmul %61, %68, %cst_52 {dimension_numbers = #tpu.dot_dimension_numbers<[1], [0], [0], [1], [0, 0, 1, 1], [], []>} : vector<16x32xf32>, vector<32x128xf32>, vector<16x128xf32> -> vector<16x128xf32>
    %78 = vector.broadcast %70 : vector<1x128xf32> to vector<16x128xf32>
    %79 = arith.addf %77, %78 : vector<16x128xf32>
    %80 = vector.extract_strided_slice %79 {offsets = [0, 0], sizes = [16, 32], strides = [1, 1]} : vector<16x128xf32> to vector<16x32xf32>
    %cst_53 = arith.constant dense<0.000000e+00> : vector<32x32xf32>
    %81 = tpu.matmul %66, %72, %cst_53 {dimension_numbers = #tpu.dot_dimension_numbers<[1], [0], [0], [1], [0, 0, 1, 1], [], []>} : vector<32x32xf32>, vector<32x32xf32>, vector<32x32xf32> -> vector<32x32xf32>
    %82 = vector.broadcast %74 : vector<1x32xf32> to vector<32x32xf32>
    %83 = arith.addf %81, %82 : vector<32x32xf32>
    %cst_54 = arith.constant dense<0.000000e+00> : vector<32x128xf32>
    %84 = tpu.matmul %0, %79, %cst_54 {dimension_numbers = #tpu.dot_dimension_numbers<[1], [0], [0], [1], [0, 0, 1, 1], [], []>} : vector<32x16xf32>, vector<16x128xf32>, vector<32x128xf32> -> vector<32x128xf32>
    %cst_55 = arith.constant dense<0.000000e+00> : vector<32x128xf32>
    %85 = tpu.matmul %1, %79, %cst_55 {dimension_numbers = #tpu.dot_dimension_numbers<[1], [0], [0], [1], [0, 0, 1, 1], [], []>} : vector<32x16xf32>, vector<16x128xf32>, vector<32x128xf32> -> vector<32x128xf32>
    %86 = vector.extract_strided_slice %84 {offsets = [0, 32], sizes = [32, 32], strides = [1, 1]} : vector<32x128xf32> to vector<32x32xf32>
    %87 = vector.extract_strided_slice %84 {offsets = [0, 64], sizes = [32, 32], strides = [1, 1]} : vector<32x128xf32> to vector<32x32xf32>
    %88 = vector.extract_strided_slice %85 {offsets = [0, 96], sizes = [32, 32], strides = [1, 1]} : vector<32x128xf32> to vector<32x32xf32>
    %89 = arith.addf %83, %87 : vector<32x32xf32>
    %90 = arith.addf %89, %88 : vector<32x32xf32>
    %91 = arith.negf %90 : vector<32x32xf32>
    %92 = math.exp %91 : vector<32x32xf32>
    %cst_56 = arith.constant 1.000000e+00 : f32
    %93 = vector.broadcast %cst_56 : f32 to vector<32x32xf32>
    %94 = arith.addf %93, %92 : vector<32x32xf32>
    %95 = arith.divf %93, %94 : vector<32x32xf32>
    %96 = arith.mulf %95, %86 : vector<32x32xf32>
    %cst_57 = arith.constant dense<0.000000e+00> : vector<16x32xf32>
    %97 = tpu.matmul %1, %96, %cst_57 {dimension_numbers = #tpu.dot_dimension_numbers<[0], [0], [1], [1], [0, 1, 1, 1], [], []>} : vector<32x16xf32>, vector<32x32xf32>, vector<16x32xf32> -> vector<16x32xf32>
    %cst_58 = arith.constant dense<0.000000e+00> : vector<16x32xf32>
    %98 = tpu.matmul %1, %95, %cst_58 {dimension_numbers = #tpu.dot_dimension_numbers<[0], [0], [1], [1], [0, 1, 1, 1], [], []>} : vector<32x16xf32>, vector<32x32xf32>, vector<16x32xf32> -> vector<16x32xf32>
    %cst_59 = arith.constant 9.99999997E-7 : f32
    %99 = vector.broadcast %cst_59 : f32 to vector<16x32xf32>
    %100 = arith.addf %98, %99 : vector<16x32xf32>
    %101 = tpu.reciprocal %100 {approx = true} : vector<16x32xf32> -> vector<16x32xf32>
    %102 = arith.mulf %97, %101 : vector<16x32xf32>
    %103 = arith.addf %80, %102 : vector<16x32xf32>
    %104 = vector.extract_strided_slice %76 {offsets = [0, 0], sizes = [1, 32], strides = [1, 1]} : vector<1x128xf32> to vector<1x32xf32>
    %105 = vector.extract_strided_slice %76 {offsets = [0, 32], sizes = [1, 32], strides = [1, 1]} : vector<1x128xf32> to vector<1x32xf32>
    %106 = vector.broadcast %104 : vector<1x32xf32> to vector<16x32xf32>
    %107 = arith.mulf %103, %106 : vector<16x32xf32>
    %108 = vector.broadcast %105 : vector<1x32xf32> to vector<16x32xf32>
    %109 = arith.addf %107, %108 : vector<16x32xf32>
    %110 = arith.addf %61, %109 : vector<16x32xf32>
    %c0_60 = arith.constant 0 : index
    %c0_61 = arith.constant 0 : index
    %111 = vector.load %arg14[%c0_60, %c0_61] : memref<32x8xf32, #tpu.memory_space<vmem>>, vector<32x8xf32>
    %cst_62 = arith.constant dense<0.000000e+00> : vector<16x8xf32>
    %112 = tpu.matmul %110, %111, %cst_62 {dimension_numbers = #tpu.dot_dimension_numbers<[1], [0], [0], [1], [0, 0, 1, 1], [], []>} : vector<16x32xf32>, vector<32x8xf32>, vector<16x8xf32> -> vector<16x8xf32>
    %c0_63 = arith.constant 0 : index
    %c0_64 = arith.constant 0 : index
    %113 = vector.load %arg15[%c0_63, %c0_64] : memref<1x8xf32, #tpu.memory_space<vmem>>, vector<1x8xf32>
    %114 = vector.broadcast %113 : vector<1x8xf32> to vector<16x8xf32>
    %115 = arith.addf %112, %114 : vector<16x8xf32>
    %c0_65 = arith.constant 0 : index
    %c0_66 = arith.constant 0 : index
    %116 = vector.load %arg16[%c0_65, %c0_66] : memref<16x8xf32, #tpu.memory_space<vmem>>, vector<16x8xf32>
    tpu.vector_store %arg16[%c0_65, %c0_66], %115 {strides = array<i32>} : memref<16x8xf32, #tpu.memory_space<vmem>>, vector<16x8xf32>,
    return
  }
  func.func @transform_0(%arg0: i32) -> (i32, i32) {
    %c0_i32 = arith.constant 0 : i32
    %c0_i32_0 = arith.constant 0 : i32
    %c0_i32_1 = arith.constant 0 : i32
    return %c0_i32, %c0_i32_0 : i32, i32
  }
  func.func @transform_1(%arg0: i32) -> (i32, i32) {
    %c0_i32 = arith.constant 0 : i32
    %c0_i32_0 = arith.constant 0 : i32
    %c0_i32_1 = arith.constant 0 : i32
    return %c0_i32, %c0_i32_0 : i32, i32
  }
  func.func @transform_2(%arg0: i32) -> (i32, i32) {
    %c0_i32 = arith.constant 0 : i32
    %c0_i32_0 = arith.constant 0 : i32
    %c0_i32_1 = arith.constant 0 : i32
    return %c0_i32, %c0_i32_0 : i32, i32
  }
  func.func @transform_3(%arg0: i32) -> (i32, i32) {
    %c0_i32 = arith.constant 0 : i32
    %c0_i32_0 = arith.constant 0 : i32
    %c0_i32_1 = arith.constant 0 : i32
    return %c0_i32, %c0_i32_0 : i32, i32
  }
  func.func @transform_4(%arg0: i32) -> (i32, i32) {
    %c0_i32 = arith.constant 0 : i32
    %c0_i32_0 = arith.constant 0 : i32
    %c0_i32_1 = arith.constant 0 : i32
    return %c0_i32, %c0_i32_0 : i32, i32
  }
  func.func @transform_5(%arg0: i32) -> (i32, i32) {
    %c0_i32 = arith.constant 0 : i32
    %c0_i32_0 = arith.constant 0 : i32
    %c0_i32_1 = arith.constant 0 : i32
    return %c0_i32, %c0_i32_0 : i32, i32
  }
  func.func @transform_6(%arg0: i32) -> (i32, i32) {
    %c0_i32 = arith.constant 0 : i32
    %c0_i32_0 = arith.constant 0 : i32
    %c0_i32_1 = arith.constant 0 : i32
    return %c0_i32, %c0_i32_0 : i32, i32
  }
  func.func @transform_7(%arg0: i32) -> (i32, i32) {
    %c0_i32 = arith.constant 0 : i32
    %c0_i32_0 = arith.constant 0 : i32
    %c0_i32_1 = arith.constant 0 : i32
    return %c0_i32, %c0_i32_0 : i32, i32
  }
  func.func @transform_8(%arg0: i32) -> (i32, i32, i32) {
    %c0_i32 = arith.constant 0 : i32
    %c0_i32_0 = arith.constant 0 : i32
    %c0_i32_1 = arith.constant 0 : i32
    %c0_i32_2 = arith.constant 0 : i32
    return %c0_i32, %c0_i32_0, %c0_i32_1 : i32, i32, i32
  }
  func.func @transform_9(%arg0: i32) -> (i32, i32, i32) {
    %c0_i32 = arith.constant 0 : i32
    %c0_i32_0 = arith.constant 0 : i32
    %c0_i32_1 = arith.constant 0 : i32
    %c0_i32_2 = arith.constant 0 : i32
    return %c0_i32, %c0_i32_0, %c0_i32_1 : i32, i32, i32
  }
  func.func @transform_10(%arg0: i32) -> (i32, i32, i32) {
    %c0_i32 = arith.constant 0 : i32
    %c0_i32_0 = arith.constant 0 : i32
    %c0_i32_1 = arith.constant 0 : i32
    %c0_i32_2 = arith.constant 0 : i32
    return %c0_i32, %c0_i32_0, %c0_i32_1 : i32, i32, i32
  }
  func.func @transform_11(%arg0: i32) -> (i32, i32, i32) {
    %c0_i32 = arith.constant 0 : i32
    %c0_i32_0 = arith.constant 0 : i32
    %c0_i32_1 = arith.constant 0 : i32
    %c0_i32_2 = arith.constant 0 : i32
    return %c0_i32, %c0_i32_0, %c0_i32_1 : i32, i32, i32
  }
  func.func @transform_12(%arg0: i32) -> (i32, i32, i32) {
    %c0_i32 = arith.constant 0 : i32
    %c0_i32_0 = arith.constant 0 : i32
    %c0_i32_1 = arith.constant 0 : i32
    %c0_i32_2 = arith.constant 0 : i32
    return %c0_i32, %c0_i32_0, %c0_i32_1 : i32, i32, i32
  }
  func.func @transform_13(%arg0: i32) -> (i32, i32) {
    %c0_i32 = arith.constant 0 : i32
    %c0_i32_0 = arith.constant 0 : i32
    %c0_i32_1 = arith.constant 0 : i32
    return %c0_i32, %c0_i32_0 : i32, i32
  }
  func.func @transform_14(%arg0: i32) -> (i32, i32) {
    %c0_i32 = arith.constant 0 : i32
    %c0_i32_0 = arith.constant 0 : i32
    %c0_i32_1 = arith.constant 0 : i32
    return %c0_i32, %c0_i32_0 : i32, i32
  }
  func.func @transform_15(%arg0: i32) -> (i32, i32) {
    %c0_i32 = arith.constant 0 : i32
    %c0_i32_0 = arith.constant 0 : i32
    %c0_i32_1 = arith.constant 0 : i32
    return %c0_i32, %c0_i32_0 : i32, i32
  }
}

</mosaic_0001>

<bundles_post_ra>
// kernel: resgated_gcn_net_forward.1
= control target key start
LH: loop header
LB: loop body
LE: loop exit
PB: predicated region body
PF: predicated region fallthrough
CT: control target
= control target key end

     0   :  { %vm65_vm0 = vcmask 64512   ;;  %v1063_v8 = vmov 0   ;;  %vm149_vm1 = vcmask 261120   ;;  %vm223_vm2 = vcmask 130048   ;;  %s1066_s16 = smov 96   ;;  %s1525_s4 = inlined_call_operand.vmem [shape: f32[8,32], index: 4, kind: input, shape index: {}]   ;;  %s1526_s0 = inlined_call_operand.vmem [shape: f32[16,8], index: 0, kind: input, shape index: {}]   ;;  %s1527_s8 = inlined_call_operand.vmem [shape: f32[2,32,128], index: 8, kind: input, shape index: {}]   ;;  %s1528_s5 = inlined_call_operand.vmem [shape: f32[1,32], index: 5, kind: input, shape index: {}]   ;;  %s1529_s9 = inlined_call_operand.vmem [shape: f32[2,1,128], index: 9, kind: input, shape index: {}]   ;;  %s1530_s1 = inlined_call_operand.vmem [shape: f32[32,1], index: 1, kind: input, shape index: {}]   ;;  %s1531_s6 = inlined_call_operand.vmem [shape: f32[1,32], index: 6, kind: input, shape index: {}]   ;;  %s1532_s7 = inlined_call_operand.vmem [shape: f32[1,32], index: 7, kind: input, shape index: {}]   ;;  %s1533_s10 = inlined_call_operand.vmem [shape: f32[2,32,32], index: 10, kind: input, shape index: {}]   ;;  %s1534_s2 = inlined_call_operand.vmem [shape: f32[32,16], index: 2, kind: input, shape index: {}]   ;;  %s1535_s3 = inlined_call_operand.vmem [shape: f32[32,16], index: 3, kind: input, shape index: {}]   ;;  %s1536_s12 = inlined_call_operand.vmem [shape: f32[2,1,128], index: 12, kind: input, shape index: {}]   ;;  %s1537_s11 = inlined_call_operand.vmem [shape: f32[2,1,32], index: 11, kind: input, shape index: {}]   ;;  %s1538_s14 = inlined_call_operand.vmem [shape: f32[1,8], index: 14, kind: input, shape index: {}]   ;;  %s1539_s13 = inlined_call_operand.vmem [shape: f32[32,8], index: 13, kind: input, shape index: {}]   ;;  %s1540_s15 = inlined_call_operand.vmem [shape: f32[16,8], index: 15, kind: output, shape index: {}]  }
   0x1   :  { %v60_v0 = vld [vmem:[%s1525_s4] sm:$0xff]  ;;  %v138_v2 = vld [vmem:[%s1527_s8 + $0x18] sm:$0xff]  ;;  %v137_v3 = vld [vmem:[%s1527_s8 + $0x10] sm:$0xff]  ;;  %1011 = vset.pattern.permute.xlu0 %v1063_v8  ;;  %1012 = vset.pattern.permute.xlu1 %v1063_v8 }
   0x2   :  { %v58_v1 = vld [vmem:[%s1526_s0] sm:$0xff]  ;;  %87 = vmatpush.msra.mxu0 %v60_v0  ;;  %168 = vmatpush.msra.mxu1 %v138_v2  ;;  %v59_v4 = vld [vmem:[%s1526_s0 + $0x8] sm:$0xff]  ;;  %v97_v15 = vld [vmem:[%s1530_s1 + $0x10] sm:$0xff] }
   0x3   :  { %947 = vmatmul.msk.f32.vlgmr.msra.gmra.mxu0 %vm65_vm0, %v58_v1  ;;  %v136_v5 = vld [vmem:[%s1527_s8 + $0x8] sm:$0xff]  ;;  %v135_v6 = vld [vmem:[%s1527_s8] sm:$0xff]  ;;  %112 = vperm.xlu1 %1012, %v97_v15   ;;  %v98_v16 = vld [vmem:[%s1530_s1 + $0x18] sm:$0xff] }
   0x4   :  { %169 = vmatpush.msra.mxu1 %v137_v3  ;;  %v95_v7 = vld [vmem:[%s1530_s1] sm:$0xff]  ;;  %v96_v9 = vld [vmem:[%s1530_s1 + $0x8] sm:$0xff]  ;;  %v143_v18 = vld [vmem:[%s1533_s10 + $0x18] sm:$0xff] }
   0x5   :  { %102 = vperm.xlu0 %1011, %v95_v7   ;;  %v1013_v10 = vld [vmem:[%s1528_s5] ss:$0 sm:$0xff]  ;;  %v142_v19 = vld [vmem:[%s1533_s10 + $0x10] sm:$0xff]  ;;  %206 = vmatpush.msra.mxu2 %v143_v18  ;;  %v141_v27 = vld [vmem:[%s1533_s10 + $0x8] sm:$0xff] }
   0x6   :  { %170 = vmatpush.msra.mxu1 %v136_v5  ;;  %v1014_v21 = vld [vmem:[%s1529_s9] ss:$0 sm:$0xff]  ;;  %v1243_v35 = vld [vmem:[%s1534_s2 + $0x8] sm:$0xff]  ;;  %v1261_v38 = vld [vmem:[%s1535_s3 + $0x10] sm:$0xff] }
   0x7   :  { %v1015_v22 = vld [vmem:[%s1531_s6] ss:$0 sm:$0xff]  ;;  %207 = vmatpush.msra.mxu2 %v142_v19  ;;  %v1248_v36 = vld [vmem:[%s1535_s3 + $0x8] sm:$0xff]  ;;  %v1266_v39 = vld [vmem:[%s1534_s2 + $0x10] sm:$0xff] }
   0x8   :  { %171 = vmatpush.msra.mxu1 %v135_v6  ;;  %v1016_v24 = vld [vmem:[%s1532_s7] ss:$0 sm:$0xff]  ;;  %v1275_v40 = vld [vmem:[%s1535_s3 + $0x18] sm:$0xff] }
   0x9   :  { %v1220_v29 = vld [vmem:[%s1534_s2] sm:$0xff]  ;;  %208 = vmatpush.msra.mxu2 %v141_v27  ;;  %v1280_v41 = vld [vmem:[%s1534_s2 + $0x18] sm:$0xff]  ;;  %s1064_s2 = smov 64  }
   0xa   :  { %v1225_v30 = vld [vmem:[%s1535_s3] sm:$0xff]  ;;  %s1065_s3 = smov 32  }
   0xb   :  { %948 = vmatmul.msk.f32.gmra.mxu0 %vm65_vm0, %v59_v4  ;;  %117 = vperm.xlu1 %1012, %v98_v16   ;;  %v140_v32 = vld [vmem:[%s1533_s10] sm:$0xff] }
   0xc   :  { %209 = vmatpush.msra.mxu2 %v140_v32  ;;  %v1309_v56 = vld [vmem:[%s1536_s12] ss:$0 sm:$0xff] }
   0xd   :  { %107 = vperm.xlu0 %1011, %v96_v9   ;;  %v1018_v60 = vld [vmem:[%s1537_s11] ss:$0 sm:$0xff] }
  0x75   :  { %v113_v42 = vpop.permute.xlu1 %112 }
  0x76   :  { %v125_v43 = vmul.f32 %v1015_v22, %v113_v42 }
  0x77   :  { %v103_v20 = vpop.permute.xlu0 %102 }
  0x78   :  { %v123_v26 = vmul.f32 %v1015_v22, %v103_v20  ;;  %v1286_v44 = vadd.f32 %v1016_v24, %v125_v43  ;;  %v978_v20 = vld [vmem:[%s1533_s10 + $0x30] sm:$0xff] }
  0x7a   :  { %v1227_v31 = vadd.f32 %v1016_v24, %v123_v26  ;;  %v976_v26 = vld [vmem:[%s1533_s10 + $0x20] sm:$0xff] }
  0x7c   :  { %951 = vmatmul.msk.f32.vlgmr.msra.gmra.mxu2 %vm149_vm1, %v1227_v31 }
  0x7d   :  { %v118_v45 = vpop.permute.xlu1 %117 }
  0x7e   :  { %v126_v46 = vmul.f32 %v1015_v22, %v118_v45 }
  0x7f   :  { %v108_v33 = vpop.permute.xlu0 %107 }
  0x80   :  { %v89_v11 = vpop.f32.mrf.mxu0  ;;  %v124_v34 = vmul.f32 %v1015_v22, %v108_v33  ;;  %v1290_v47 = vadd.f32 %v1016_v24, %v126_v46 }
  0x81   :  { %v1179_v12 = vadd.f32 %v1013_v10, %v89_v11 }
  0x82   :  { %v1250_v37 = vadd.f32 %v1016_v24, %v124_v34 }
  0x83   :  { %949 = vmatmul.msk.f32.vlgmr.msra.gmra.mxu1 %vm149_vm1, %v1179_v12 }
  0x84   :  { %952 = vmatmul.msk.f32.gmra.mxu2 %vm149_vm1, %v1250_v37 }
  0x88   :  { %v92_v13 = vpop.f32.mrf.mxu0 }
  0x89   :  { %v1183_v14 = vadd.f32 %v1013_v10, %v92_v13 }
  0x8b   :  { %950 = vmatmul.msk.f32.gmra.mxu1 %vm149_vm1, %v1183_v14 }
  0x8c   :  { %953 = vmatmul.msk.f32.gmra.mxu2 %vm149_vm1, %v1286_v44 }
  0x94   :  { %954 = vmatmul.msk.f32.gmra.mxu2 %vm149_vm1, %v1290_v47 }
  0xff   :  { %v211_v57 = vpop.f32.mrf.mxu2 }
 0x100   :  { %v173_v17 = vpop.f32.mrf.mxu1  ;;  %v212_v24 = vadd.f32 %v1018_v60, %v211_v57 }
 0x101   :  { %v1213_v28 = vadd.f32 %v1014_v21, %v173_v17  ;;  %v979_v17 = vld [vmem:[%s1533_s10 + $0x38] sm:$0xff] }
 0x102   :  { %633 = vmatpush.msrb.mxu2 %v979_v17 }
 0x104   :  { %634 = vmatpush.msrb.mxu2 %v978_v20 }
 0x107   :  { %v214_v58 = vpop.f32.mrf.mxu2 }
 0x108   :  { %v176_v23 = vpop.f32.mrf.mxu1  ;;  %v215_v5 = vadd.f32 %v1018_v60, %v214_v58 }
 0x109   :  { %v1208_v25 = vadd.f32 %v1014_v21, %v176_v23  ;;  %v977_v23 = vld [vmem:[%s1533_s10 + $0x28] sm:$0xff] }
 0x10a   :  { %635 = vmatpush.msrb.mxu2 %v977_v23 }
 0x10b   :  { %250 = vmatpush.msra.mxu3 %v1208_v25  ;;  %291 = vmatpush.msrb.mxu0 %v1208_v25 }
 0x10c   :  { %636 = vmatpush.msrb.mxu2 %v976_v26 }
 0x10d   :  { %251 = vmatpush.msra.mxu3 %v1213_v28  ;;  %292 = vmatpush.msrb.mxu0 %v1213_v28 }
 0x10e   :  { %955 = vmatmul.msk.f32.vlgmr.msra.gmra.mxu3 %vm223_vm2, %v1220_v29  ;;  %959 = vmatmul.msk.f32.vlgmr.msrb.gmra.mxu0 %vm223_vm2, %v1225_v30 }
 0x10f   :  { %v217_v61 = vpop.f32.mrf.mxu2 }
 0x110   :  { %v218_v62 = vadd.f32 %v1018_v60, %v217_v61 }
 0x116   :  { %956 = vmatmul.msk.f32.gmra.mxu3 %vm223_vm2, %v1243_v35  ;;  %960 = vmatmul.msk.f32.gmra.mxu0 %vm223_vm2, %v1248_v36 }
 0x117   :  { %v220_v4 = vpop.f32.mrf.mxu2 }
 0x118   :  { %v221_v6 = vadd.f32 %v1018_v60, %v220_v4 }
 0x11e   :  { %961 = vmatmul.msk.f32.gmra.mxu0 %vm223_vm2, %v1261_v38  ;;  %957 = vmatmul.msk.f32.gmra.mxu3 %vm223_vm2, %v1266_v39 }
 0x126   :  { %962 = vmatmul.msk.f32.gmra.mxu0 %vm223_vm2, %v1275_v40  ;;  %958 = vmatmul.msk.f32.gmra.mxu3 %vm223_vm2, %v1280_v41 }
 0x18b   :  { %v294_v48 = vpop.f32.mrf.mxu0 }
 0x191   :  { %v253_v49 = vpop.f32.mrf.mxu3 }
 0x193   :  { %v297_v50 = vpop.f32.mrf.mxu0 }
 0x199   :  { %v256_v51 = vpop.f32.mrf.mxu3 }
 0x19a   :  { %312 = vrot.lane.b32.xlu1 %v256_v51, %s1064_s2 }
 0x19b   :  { %v300_v52 = vpop.f32.mrf.mxu0 }
 0x19c   :  { %334 = vrot.lane.b32.xlu2 %v300_v52, %s1065_s3 }
 0x1a1   :  { %v259_v53 = vpop.f32.mrf.mxu3 }
 0x1a2   :  { %332 = vrot.lane.b32.xlu1 %v297_v50, %s1065_s3 }
 0x1a3   :  { %v303_v54 = vpop.f32.mrf.mxu0 }
 0x1a4   :  { %336 = vrot.lane.b32.xlu0 %v303_v54, %s1065_s3  ;;  %314 = vrot.lane.b32.xlu2 %v259_v53, %s1064_s2 }
 0x1a9   :  { %v262_v55 = vpop.f32.mrf.mxu3 }
 0x1aa   :  { %426 = vrot.lane.b32.xlu1 %v259_v53, %s1066_s16 }
 0x1ac   :  { %310 = vrot.lane.b32.xlu0 %v253_v49, %s1064_s2  ;;  %316 = vrot.lane.b32.xlu2 %v262_v55, %s1064_s2 }
 0x1b4   :  { %428 = vrot.lane.b32.xlu0 %v262_v55, %s1066_s16  ;;  %330 = vrot.lane.b32.xlu2 %v294_v48, %s1065_s3 }
 0x1bc   :  { %422 = vrot.lane.b32.xlu0 %v253_v49, %s1066_s16  ;;  %424 = vrot.lane.b32.xlu2 %v256_v51, %s1066_s16 }
 0x1c4   :  { %540 = vrot.lane.b32.xlu0 %v1309_v56, %s1064_s2  ;;  %533 = vrot.lane.b32.xlu2 %v1309_v56, %s1066_s16 }
 0x1cc   :  { %547 = vrot.lane.b32.xlu2 %v1309_v56, %s1065_s3 }
 0x1df   :  { %438 = vxpose.xlu1.b32.start [1/4] (short) (narrow) %v1225_v30, 16 }
 0x1e7   :  { %439 = vxpose.xlu1.b32.cont [2/4] (short) (narrow) %v1248_v36, 16 }
 0x1ef   :  { %440 = vxpose.xlu1.b32.cont [3/4] (short) (narrow) %v1261_v38, 16 }
 0x1f6   :  { %v335_v59 = vpop.permute.xlu2 %334 }
 0x1f7   :  { %441 = vxpose.xlu1.b32.end [4/4] (short) (narrow) %v1275_v40, 16 }
 0x1fe   :  { %v315_v63 = vpop.permute.xlu2 %314 }
 0x1ff   :  { %v324_v0 = vadd.f32 %v315_v63, %v218_v62 }
 0x201   :  { %v1324_v1 = vadd.f32 %v335_v59, %v324_v0 }
 0x203   :  { %v965_v2 = vmul.f32 -1.442695, %v1324_v1 }
 0x205   :  { %1023 = vpow2.f32 %v965_v2 }
 0x206   :  { %v317_v8 = vpop.permute.xlu2 %316 }
 0x207   :  { %v325_v11 = vadd.f32 %v317_v8, %v221_v6 }
 0x20b   :  { %v1024_v7 = vpop.eup %1023 }
 0x20c   :  { %v313_v3 = vpop.permute.xlu1 %312  ;;  %v1327_v9 = vadd.f32 1.0, %v1024_v7 }
 0x20d   :  { %v323_v10 = vadd.f32 %v313_v3, %v215_v5 }
 0x20e   :  { %1025 = vrcp.f32 %v1327_v9  ;;  %v331_v22 = vpop.permute.xlu2 %330  ;;  %vm397_vm3 = vweird.f32 %v1327_v9  ;;  %v403_v5 = vand.u32 2147483648, %v1327_v9 }
 0x214   :  { %v333_v13 = vpop.permute.xlu1 %332  ;;  %v1026_v27 = vpop.eup %1025 }
 0x215   :  { %v1329_v15 = vadd.f32 %v333_v13, %v323_v10  ;;  %v393_v43 = vmul.f32 %v1026_v27, %v1327_v9  ;;  %vm398_vm4 = vweird.f32 %v1026_v27  ;;  %v401_v10 = vand.u32 2147483647, %v1327_v9 }
 0x216   :  { %v337_v16 = vpop.permute.xlu0 %336  ;;  %v425_v50 = vpop.permute.xlu2 %424  ;;  %vm1359_vm8 = vmor %vm397_vm3, %vm398_vm4 }
 0x217   :  { %v964_v18 = vmul.f32 -1.442695, %v1329_v15  ;;  %v1336_v19 = vadd.f32 %v337_v16, %v325_v11  ;;  %v394_v51 = vsub.f32 1.0, %v393_v43  ;;  %vm402_vm13 = vcmp.eq.f32.partialorder %v401_v10, 8.507059e+37 }
 0x219   :  { %1027 = vpow2.f32 %v964_v18  ;;  %v966_v21 = vmul.f32 -1.442695, %v1336_v19  ;;  %v395_v54 = vmul.f32 %v1026_v27, %v394_v51 }
 0x21b   :  { %1029 = vpow2.f32 %v966_v21  ;;  %v396_v61 = vadd.f32 %v1026_v27, %v395_v54  ;;  %v404_v21 = vor.u32 1.1754944e-38, %v403_v5 }
 0x21d   :  { %v400_v16 = vsel %vm1359_vm8, %v1026_v27, %v396_v61 }
 0x21e   :  { %v311_v32 = vpop.permute.xlu0 %310  ;;  %v1352_v0 = vpop.permute.xlu2 %533  ;;  %v405_v9 = vsel %vm402_vm13, %v404_v21, %v400_v16 }
 0x21f   :  { %v1028_v33 = vpop.eup %1027  ;;  %v322_v34 = vadd.f32 %v311_v32, %v212_v24 }
 0x220   :  { %v359_v42 = vadd.f32 1.0, %v1028_v33  ;;  %v427_v33 = vpop.permute.xlu1 %426 }
 0x221   :  { %v1030_v45 = vpop.eup %1029  ;;  %v342_v46 = vadd.f32 %v331_v22, %v322_v34 }
 0x222   :  { %1031 = vrcp.f32 %v359_v42  ;;  %v361_v48 = vadd.f32 1.0, %v1030_v45  ;;  %v388_v13 = vand.u32 2147483648, %v359_v42  ;;  %vm382_vm10 = vweird.f32 %v359_v42 }
 0x223   :  { %v963_v49 = vmul.f32 -1.442695, %v342_v46  ;;  %v386_v18 = vand.u32 2147483647, %v359_v42 }
 0x224   :  { %1033 = vrcp.f32 %v361_v48  ;;  %vm412_vm5 = vweird.f32 %v361_v48  ;;  %v418_v63 = vand.u32 2147483648, %v361_v48  ;;  %v416_v4 = vand.u32 2147483647, %v361_v48 }
 0x225   :  { %1035 = vpow2.f32 %v963_v49  ;;  %v389_v26 = vor.u32 1.1754944e-38, %v388_v13  ;;  %vm387_vm14 = vcmp.eq.f32.partialorder %v386_v18, 8.507059e+37 }
 0x226   :  { %v429_v52 = vpop.permute.xlu0 %428  ;;  %v419_v17 = vor.u32 1.1754944e-38, %v418_v63  ;;  %vm417_vm11 = vcmp.eq.f32.partialorder %v416_v4, 8.507059e+37 }
 0x228   :  { %v1032_v53 = vpop.eup %1031 }
 0x229   :  { %v378_v55 = vmul.f32 %v1032_v53, %v359_v42  ;;  %vm383_vm7 = vweird.f32 %v1032_v53  ;;  %v548_v42 = vpop.permute.xlu2 %547 }
 0x22a   :  { %v1034_v57 = vpop.eup %1033  ;;  %vm384_vm12 = vmor %vm382_vm10, %vm383_vm7 }
 0x22b   :  { %v1036_v58 = vpop.eup %1035  ;;  %v379_v59 = vsub.f32 1.0, %v378_v55  ;;  %v408_v60 = vmul.f32 %v1034_v57, %v361_v48  ;;  %vm413_vm6 = vweird.f32 %v1034_v57  ;;  %v436_v48 = vmul.f32 %v427_v33, %v405_v9 }
 0x22c   :  { %v1350_v62 = vadd.f32 1.0, %v1036_v58  ;;  %vm414_vm9 = vmor %vm412_vm5, %vm413_vm6 }
 0x22d   :  { %v380_v2 = vmul.f32 %v1032_v53, %v379_v59  ;;  %v409_v3 = vsub.f32 1.0, %v408_v60 }
 0x22e   :  { %1037 = vrcp.f32 %v1350_v62  ;;  %v423_v6 = vpop.permute.xlu0 %422  ;;  %v373_v54 = vand.u32 2147483648, %v1350_v62  ;;  %vm367_vm3 = vweird.f32 %v1350_v62 }
 0x22f   :  { %v381_v7 = vadd.f32 %v1032_v53, %v380_v2  ;;  %v410_v11 = vmul.f32 %v1034_v57, %v409_v3 }
 0x230   :  { %v374_v60 = vor.u32 1.1754944e-38, %v373_v54 }
 0x231   :  { %v411_v20 = vadd.f32 %v1034_v57, %v410_v11  ;;  %v385_v22 = vsel %vm384_vm12, %v1032_v53, %v381_v7  ;;  %v371_v53 = vand.u32 2147483647, %v1350_v62 }
 0x232   :  { %v390_v43 = vsel %vm387_vm14, %v389_v26, %v385_v22 }
 0x233   :  { %v415_v23 = vsel %vm414_vm9, %v1034_v57, %v411_v20  ;;  %v435_v55 = vmul.f32 %v425_v50, %v390_v43  ;;  %vm372_vm5 = vcmp.eq.f32.partialorder %v371_v53, 8.507059e+37 }
 0x234   :  { %v1038_v24 = vpop.eup %1037  ;;  %v420_v32 = vsel %vm417_vm11, %v419_v17, %v415_v23 }
 0x235   :  { %v437_v34 = vmul.f32 %v429_v52, %v420_v32  ;;  %v363_v27 = vmul.f32 %v1038_v24, %v1350_v62  ;;  %511 = vmatpush.msrb.mxu3 %v420_v32  ;;  %vm368_vm15 = vweird.f32 %v1038_v24 }
 0x236   :  { %v541_v45 = vpop.permute.xlu0 %540  ;;  %vm369_vm4 = vmor %vm367_vm3, %vm368_vm15 }
 0x237   :  { %v364_v49 = vsub.f32 1.0, %v363_v27  ;;  %v543_v51 = vmul.f32 %v541_v45, %v342_v46  ;;  %488 = vmatpush.msrb.mxu1 %v437_v34  ;;  %512 = vmatpush.msrb.mxu3 %v405_v9  ;;  %v544_v59 = vmul.f32 %v541_v45, %v1329_v15  ;;  %v545_v3 = vmul.f32 %v541_v45, %v1324_v1  ;;  %v972_v1 = vld [vmem:[%s1527_s8 + $0x28] sm:$0xff] }
 0x239   :  { %v365_v57 = vmul.f32 %v1038_v24, %v364_v49  ;;  %v550_v58 = vadd.f32 %v548_v42, %v543_v51  ;;  %489 = vmatpush.msrb.mxu1 %v436_v48  ;;  %513 = vmatpush.msrb.mxu3 %v390_v43  ;;  %v551_v2 = vadd.f32 %v548_v42, %v544_v59  ;;  %v1019_v51 = vld [vmem:[%s1537_s11 + $0x1] ss:$0 sm:$0xff] }
 0x23a   :  { %v552_v15 = vadd.f32 %v548_v42, %v545_v3 }
 0x23b   :  { %v366_v52 = vadd.f32 %v1038_v24, %v365_v57  ;;  %490 = vmatpush.msrb.mxu1 %v435_v55  ;;  %v554_v46 = vadd.f32 %v550_v58, %v1227_v31  ;;  %v555_v62 = vadd.f32 %v551_v2, %v1250_v37  ;;  %v546_v31 = vmul.f32 %v541_v45, %v1336_v19  ;;  %v971_v19 = vld [vmem:[%s1527_s8 + $0x20] sm:$0xff] }
 0x23c   :  { %v556_v4 = vadd.f32 %v552_v15, %v1286_v44  ;;  %v974_v44 = vld [vmem:[%s1527_s8 + $0x38] sm:$0xff] }
 0x23d   :  { %v370_v61 = vsel %vm369_vm4, %v1038_v24, %v366_v52  ;;  %984 = vmatmul.msk.f32.vlgmr.msrb.gmra.mxu2 %vm149_vm1, %v554_v46  ;;  %v553_v5 = vadd.f32 %v548_v42, %v546_v31 }
 0x23e   :  { %v375_v50 = vsel %vm372_vm5, %v374_v60, %v370_v61 }
 0x23f   :  { %v434_v63 = vmul.f32 %v423_v6, %v375_v50  ;;  %514 = vmatpush.msrb.mxu3 %v375_v50  ;;  %v557_v7 = vadd.f32 %v553_v5, %v1290_v47  ;;  %v973_v47 = vld [vmem:[%s1527_s8 + $0x30] sm:$0xff] }
 0x241   :  { %491 = vmatpush.msrb.mxu1 %v434_v63 }
 0x243   :  { %595 = vmatpush.msra.mxu1 %v974_v44 }
 0x245   :  { %985 = vmatmul.msk.f32.gmra.mxu2 %vm149_vm1, %v555_v62  ;;  %596 = vmatpush.msra.mxu1 %v973_v47 }
 0x247   :  { %597 = vmatpush.msra.mxu1 %v972_v1 }
 0x249   :  { %598 = vmatpush.msra.mxu1 %v971_v19 }
 0x24d   :  { %986 = vmatmul.msk.f32.gmra.mxu2 %vm149_vm1, %v556_v4 }
 0x255   :  { %987 = vmatmul.msk.f32.gmra.mxu2 %vm149_vm1, %v557_v7 }
 0x283   :  { %v1382_v6 = vpop.trf.xlu1 }
 0x284   :  { %967 = vmatmul.msk.f32.vlgmr.msrb.gmra.mxu1 %vm149_vm1, %v1382_v6  ;;  %969 = vmatmul.msk.f32.vlgmr.msrb.gmra.mxu3 %vm149_vm1, %v1382_v6 }
 0x28b   :  { %v1388_v37 = vpop.trf.xlu1 }
 0x28c   :  { %968 = vmatmul.msk.f32.gmra.mxu1 %vm149_vm1, %v1388_v37  ;;  %970 = vmatmul.msk.f32.gmra.mxu3 %vm149_vm1, %v1388_v37 }
 0x301   :  { %v493_v11 = vpop.f32.mrf.mxu1 }
 0x307   :  { %v516_v8 = vpop.f32.mrf.mxu3 }
 0x308   :  { %v517_v10 = vadd.f32 1e-06, %v516_v8 }
 0x309   :  { %v496_v24 = vpop.f32.mrf.mxu1 }
 0x30a   :  { %1039 = vrcp.f32 %v517_v10 }
 0x30f   :  { %v519_v13 = vpop.f32.mrf.mxu3 }
 0x310   :  { %v1040_v16 = vpop.eup %1039  ;;  %v520_v17 = vadd.f32 1e-06, %v519_v13 }
 0x311   :  { %v524_v18 = vmul.f32 %v1040_v16, %v493_v11 }
 0x312   :  { %1041 = vrcp.f32 %v520_v17 }
 0x313   :  { %v526_v20 = vadd.f32 %v524_v18, %v1213_v28 }
 0x315   :  { %v531_v21 = vmul.f32 %v1309_v56, %v526_v20 }
 0x317   :  { %v536_v22 = vadd.f32 %v1352_v0, %v531_v21 }
 0x318   :  { %v1042_v23 = vpop.eup %1041 }
 0x319   :  { %v525_v26 = vmul.f32 %v1042_v23, %v496_v24  ;;  %v1410_v9 = vadd.f32 %v536_v22, %v1179_v12  ;;  %v1020_v12 = vld [vmem:[%s1529_s9 + $0x1] ss:$0 sm:$0xff] }
 0x31b   :  { %982 = vmatmul.msk.f32.vlgmr.msra.gmra.mxu1 %vm149_vm1, %v1410_v9  ;;  %v527_v32 = vadd.f32 %v525_v26, %v1208_v25 }
 0x31d   :  { %v532_v33 = vmul.f32 %v1309_v56, %v527_v32 }
 0x31f   :  { %v537_v34 = vadd.f32 %v1352_v0, %v532_v33 }
 0x321   :  { %v1418_v28 = vadd.f32 %v537_v34, %v1183_v14 }
 0x323   :  { %983 = vmatmul.msk.f32.gmra.mxu1 %vm149_vm1, %v1418_v28 }
 0x398   :  { %v600_v27 = vpop.f32.mrf.mxu1 }
 0x399   :  { %v1427_v42 = vadd.f32 %v1020_v12, %v600_v27 }
 0x3a0   :  { %v603_v43 = vpop.f32.mrf.mxu1 }
 0x3a1   :  { %v1425_v45 = vadd.f32 %v1020_v12, %v603_v43 }
 0x3a3   :  { %664 = vmatpush.msra.mxu0 %v1425_v45  ;;  %693 = vmatpush.msra.mxu3 %v1425_v45 }
 0x3a5   :  { %665 = vmatpush.msra.mxu0 %v1427_v42  ;;  %694 = vmatpush.msra.mxu3 %v1427_v42 }
 0x3a6   :  { %988 = vmatmul.msk.f32.vlgmr.msra.gmra.mxu0 %vm223_vm2, %v1220_v29  ;;  %992 = vmatmul.msk.f32.vlgmr.msra.gmra.mxu3 %vm223_vm2, %v1225_v30 }
 0x3ae   :  { %989 = vmatmul.msk.f32.gmra.mxu0 %vm223_vm2, %v1243_v35  ;;  %993 = vmatmul.msk.f32.gmra.mxu3 %vm223_vm2, %v1248_v36 }
 0x3b6   :  { %990 = vmatmul.msk.f32.gmra.mxu0 %vm223_vm2, %v1266_v39  ;;  %994 = vmatmul.msk.f32.gmra.mxu3 %vm223_vm2, %v1261_v38 }
 0x3be   :  { %991 = vmatmul.msk.f32.gmra.mxu0 %vm223_vm2, %v1280_v41  ;;  %995 = vmatmul.msk.f32.gmra.mxu3 %vm223_vm2, %v1275_v40  ;;  %v638_v41 = vpop.f32.mrf.mxu2 }
 0x3bf   :  { %v639_v57 = vadd.f32 %v1019_v51, %v638_v41 }
 0x3c6   :  { %v641_v0 = vpop.f32.mrf.mxu2 }
 0x3c7   :  { %v642_v44 = vadd.f32 %v1019_v51, %v641_v0 }
 0x3ce   :  { %v644_v49 = vpop.f32.mrf.mxu2 }
 0x3cf   :  { %v645_v53 = vadd.f32 %v1019_v51, %v644_v49 }
 0x3d6   :  { %v647_v63 = vpop.f32.mrf.mxu2 }
 0x3d7   :  { %v648_v3 = vadd.f32 %v1019_v51, %v647_v63 }
 0x423   :  { %v667_v14 = vpop.f32.mrf.mxu0 }
 0x424   :  { %712 = vrot.lane.b32.xlu2 %v667_v14, %s1064_s2 }
 0x429   :  { %v696_v25 = vpop.f32.mrf.mxu3 }
 0x42b   :  { %v670_v29 = vpop.f32.mrf.mxu0 }
 0x42c   :  { %714 = vrot.lane.b32.xlu2 %v670_v29, %s1064_s2 }
 0x431   :  { %v699_v30 = vpop.f32.mrf.mxu3 }
 0x433   :  { %v673_v35 = vpop.f32.mrf.mxu0 }
 0x434   :  { %716 = vrot.lane.b32.xlu2 %v673_v35, %s1064_s2 }
 0x439   :  { %v702_v36 = vpop.f32.mrf.mxu3 }
 0x43a   :  { %736 = vrot.lane.b32.xlu0 %v702_v36, %s1065_s3 }
 0x43b   :  { %v676_v38 = vpop.f32.mrf.mxu0 }
 0x43c   :  { %732 = vrot.lane.b32.xlu2 %v696_v25, %s1065_s3 }
 0x441   :  { %v705_v39 = vpop.f32.mrf.mxu3 }
 0x442   :  { %718 = vrot.lane.b32.xlu0 %v676_v38, %s1064_s2 }
 0x444   :  { %828 = vrot.lane.b32.xlu2 %v673_v35, %s1066_s16 }
 0x44a   :  { %738 = vrot.lane.b32.xlu0 %v705_v39, %s1065_s3 }
 0x44c   :  { %824 = vrot.lane.b32.xlu2 %v667_v14, %s1066_s16 }
 0x452   :  { %734 = vrot.lane.b32.xlu0 %v699_v30, %s1065_s3 }
 0x45a   :  { %830 = vrot.lane.b32.xlu0 %v676_v38, %s1066_s16 }
 0x462   :  { %826 = vrot.lane.b32.xlu0 %v670_v29, %s1066_s16 }
 0x47e   :  { %v713_v40 = vpop.permute.xlu2 %712 }
 0x47f   :  { %v724_v59 = vadd.f32 %v713_v40, %v639_v57 }
 0x486   :  { %v715_v56 = vpop.permute.xlu2 %714 }
 0x487   :  { %v725_v1 = vadd.f32 %v715_v56, %v642_v44 }
 0x48e   :  { %v717_v48 = vpop.permute.xlu2 %716 }
 0x48f   :  { %v726_v54 = vadd.f32 %v717_v48, %v645_v53 }
 0x496   :  { %v733_v52 = vpop.permute.xlu2 %732 }
 0x497   :  { %v744_v60 = vadd.f32 %v733_v52, %v724_v59 }
 0x499   :  { %v996_v50 = vmul.f32 -1.442695, %v744_v60 }
 0x49e   :  { %v829_v49 = vpop.permute.xlu2 %828 }
 0x4a6   :  { %v825_v44 = vpop.permute.xlu2 %824 }
 0x4ac   :  { %v737_v55 = vpop.permute.xlu0 %736 }
 0x4ad   :  { %v746_v58 = vadd.f32 %v737_v55, %v726_v54 }
 0x4af   :  { %v998_v46 = vmul.f32 -1.442695, %v746_v58 }
 0x4b1   :  { %1043 = vpow2.f32 %v998_v46 }
 0x4b2   :  { %1045 = vpow2.f32 %v996_v50 }
 0x4b4   :  { %v719_v61 = vpop.permute.xlu0 %718 }
 0x4b5   :  { %v727_v15 = vadd.f32 %v719_v61, %v648_v3 }
 0x4b7   :  { %v1044_v2 = vpop.eup %1043 }
 0x4b8   :  { %v762_v62 = vadd.f32 1.0, %v1044_v2  ;;  %v1046_v5 = vpop.eup %1045 }
 0x4b9   :  { %v1464_v47 = vadd.f32 1.0, %v1046_v5 }
 0x4ba   :  { %1047 = vrcp.f32 %v762_v62  ;;  %vm799_vm6 = vweird.f32 %v762_v62  ;;  %v805_v43 = vand.u32 2147483648, %v762_v62  ;;  %v803_v29 = vand.u32 2147483647, %v762_v62 }
 0x4bb   :  { %vm769_vm14 = vweird.f32 %v1464_v47  ;;  %v773_v58 = vand.u32 2147483647, %v1464_v47  ;;  %v775_v52 = vand.u32 2147483648, %v1464_v47 }
 0x4bc   :  { %v739_v31 = vpop.permute.xlu0 %738  ;;  %v806_v56 = vor.u32 1.1754944e-38, %v805_v43  ;;  %vm804_vm12 = vcmp.eq.f32.partialorder %v803_v29, 8.507059e+37 }
 0x4bd   :  { %v747_v4 = vadd.f32 %v739_v31, %v727_v15  ;;  %v776_v2 = vor.u32 1.1754944e-38, %v775_v52 }
 0x4bf   :  { %v999_v7 = vmul.f32 -1.442695, %v747_v4 }
 0x4c0   :  { %v1048_v19 = vpop.eup %1047 }
 0x4c1   :  { %1049 = vpow2.f32 %v999_v7  ;;  %v795_v13 = vmul.f32 %v1048_v19, %v762_v62  ;;  %vm800_vm2 = vweird.f32 %v1048_v19  ;;  %v1021_v62 = vld [vmem:[%s1536_s12 + $0x1] ss:$0 sm:$0xff] }
 0x4c2   :  { %1051 = vrcp.f32 %v1464_v47  ;;  %vm1471_vm8 = vmor %vm799_vm6, %vm800_vm2  ;;  %vm774_vm2 = vcmp.eq.f32.partialorder %v773_v58, 8.507059e+37  ;;  %897 = vrot.lane.b32.xlu0 %v1021_v62, %s1066_s16 }
 0x4c3   :  { %v796_v18 = vsub.f32 1.0, %v795_v13 }
 0x4c4   :  { %v735_v8 = vpop.permute.xlu0 %734 }
 0x4c5   :  { %v745_v10 = vadd.f32 %v735_v8, %v725_v1  ;;  %v797_v23 = vmul.f32 %v1048_v19, %v796_v18  ;;  %v907_v1 = vld [vmem:[%s1539_s13 + $0x18] sm:$0xff] }
 0x4c6   :  { %930 = vmatpush.msra.mxu2 %v907_v1 }
 0x4c7   :  { %v1050_v11 = vpop.eup %1049  ;;  %v997_v16 = vmul.f32 -1.442695, %v745_v10  ;;  %v798_v27 = vadd.f32 %v1048_v19, %v797_v23  ;;  %v905_v10 = vld [vmem:[%s1539_s13 + $0x8] sm:$0xff] }
 0x4c8   :  { %v763_v17 = vadd.f32 1.0, %v1050_v11  ;;  %v1467_v20 = vpop.eup %1051 }
 0x4c9   :  { %1053 = vpow2.f32 %v997_v16  ;;  %v765_v22 = vmul.f32 %v1467_v20, %v1464_v47  ;;  %v802_v38 = vsel %vm1471_vm8, %v1048_v19, %v798_v27  ;;  %vm770_vm13 = vweird.f32 %v1467_v20  ;;  %v906_v19 = vld [vmem:[%s1539_s13 + $0x10] sm:$0xff] }
 0x4ca   :  { %1055 = vrcp.f32 %v763_v17  ;;  %v820_v12 = vand.u32 2147483648, %v763_v17  ;;  %v818_v25 = vand.u32 2147483647, %v763_v17  ;;  %vm814_vm9 = vweird.f32 %v763_v17  ;;  %vm771_vm3 = vmor %vm769_vm14, %vm770_vm13  ;;  %931 = vmatpush.msra.mxu2 %v906_v19 }
 0x4cb   :  { %v766_v33 = vsub.f32 1.0, %v765_v22  ;;  %v807_v53 = vsel %vm804_vm12, %v806_v56, %v802_v38 }
 0x4cc   :  { %v831_v40 = vpop.permute.xlu0 %830  ;;  %v821_v41 = vor.u32 1.1754944e-38, %v820_v12  ;;  %vm819_vm11 = vcmp.eq.f32.partialorder %v818_v25, 8.507059e+37  ;;  %v838_v61 = vmul.f32 %v829_v49, %v807_v53  ;;  %932 = vmatpush.msra.mxu2 %v905_v10 }
 0x4cd   :  { %v767_v35 = vmul.f32 %v1467_v20, %v766_v33 }
 0x4cf   :  { %v1054_v21 = vpop.eup %1053  ;;  %v768_v54 = vadd.f32 %v1467_v20, %v767_v35 }
 0x4d0   :  { %v1056_v24 = vpop.eup %1055  ;;  %v761_v26 = vadd.f32 1.0, %v1054_v21 }
 0x4d1   :  { %v810_v32 = vmul.f32 %v1056_v24, %v763_v17  ;;  %vm815_vm7 = vweird.f32 %v1056_v24  ;;  %v772_v50 = vsel %vm771_vm3, %v1467_v20, %v768_v54 }
 0x4d2   :  { %1057 = vrcp.f32 %v761_v26  ;;  %vm816_vm10 = vmor %vm814_vm9, %vm815_vm7  ;;  %v790_v59 = vand.u32 2147483648, %v761_v26  ;;  %v788_v60 = vand.u32 2147483647, %v761_v26  ;;  %vm784_vm4 = vweird.f32 %v761_v26 }
 0x4d3   :  { %v811_v34 = vsub.f32 1.0, %v810_v32  ;;  %v777_v31 = vsel %vm774_vm2, %v776_v2, %v772_v50 }
 0x4d4   :  { %v791_v3 = vor.u32 1.1754944e-38, %v790_v59  ;;  %vm789_vm6 = vcmp.eq.f32.partialorder %v788_v60, 8.507059e+37  ;;  %v827_v4 = vpop.permute.xlu0 %826  ;;  %v836_v47 = vmul.f32 %v825_v44, %v777_v31 }
 0x4d5   :  { %v812_v14 = vmul.f32 %v1056_v24, %v811_v34 }
 0x4d7   :  { %v813_v36 = vadd.f32 %v1056_v24, %v812_v14 }
 0x4d8   :  { %v1058_v39 = vpop.eup %1057 }
 0x4d9   :  { %v817_v0 = vsel %vm816_vm10, %v1056_v24, %v813_v36  ;;  %v780_v48 = vmul.f32 %v1058_v39, %v761_v26  ;;  %vm785_vm15 = vweird.f32 %v1058_v39 }
 0x4da   :  { %v822_v51 = vsel %vm819_vm11, %v821_v41, %v817_v0  ;;  %vm786_vm5 = vmor %vm784_vm4, %vm785_vm15 }
 0x4db   :  { %v839_v55 = vmul.f32 %v831_v40, %v822_v51  ;;  %v781_v57 = vsub.f32 1.0, %v780_v48 }
 0x4dd   :  { %v782_v46 = vmul.f32 %v1058_v39, %v781_v57  ;;  %852 = vmatpush.msrb.mxu1 %v839_v55 }
 0x4df   :  { %v783_v63 = vadd.f32 %v1058_v39, %v782_v46  ;;  %853 = vmatpush.msrb.mxu1 %v838_v61 }
 0x4e1   :  { %v787_v15 = vsel %vm786_vm5, %v1058_v39, %v783_v63 }
 0x4e2   :  { %v792_v5 = vsel %vm789_vm6, %v791_v3, %v787_v15 }
 0x4e3   :  { %v837_v7 = vmul.f32 %v827_v4, %v792_v5 }
 0x4e5   :  { %854 = vmatpush.msrb.mxu1 %v837_v7 }
 0x4e7   :  { %855 = vmatpush.msrb.mxu1 %v836_v47 }
 0x4e8   :  { %1000 = vmatmul.msk.f32.vlgmr.msrb.gmra.mxu1 %vm149_vm1, %v1382_v6 }
 0x4e9   :  { %875 = vmatpush.msra.mxu1 %v822_v51 }
 0x4eb   :  { %876 = vmatpush.msra.mxu1 %v807_v53 }
 0x4ed   :  { %877 = vmatpush.msra.mxu1 %v792_v5 }
 0x4ef   :  { %878 = vmatpush.msra.mxu1 %v777_v31 }
 0x4f0   :  { %1001 = vmatmul.msk.f32.gmra.mxu1 %vm149_vm1, %v1388_v37 }
 0x4f8   :  { %1002 = vmatmul.msk.f32.vlgmr.msra.gmra.mxu1 %vm149_vm1, %v1382_v6  ;;  %v904_v6 = vld [vmem:[%s1539_s13] sm:$0xff] }
 0x4f9   :  { %933 = vmatpush.msra.mxu2 %v904_v6 }
 0x500   :  { %1003 = vmatmul.msk.f32.gmra.mxu1 %vm149_vm1, %v1388_v37 }
 0x534   :  { %v898_v22 = vpop.permute.xlu0 %897 }
 0x565   :  { %v857_v8 = vpop.f32.mrf.mxu1 }
 0x56d   :  { %v860_v37 = vpop.f32.mrf.mxu1 }
 0x575   :  { %v880_v11 = vpop.f32.mrf.mxu1 }
 0x576   :  { %v881_v13 = vadd.f32 1e-06, %v880_v11 }
 0x578   :  { %1059 = vrcp.f32 %v881_v13 }
 0x57d   :  { %v883_v16 = vpop.f32.mrf.mxu1 }
 0x57e   :  { %v1060_v17 = vpop.eup %1059  ;;  %v884_v18 = vadd.f32 1e-06, %v883_v16 }
 0x57f   :  { %v888_v20 = vmul.f32 %v1060_v17, %v857_v8 }
 0x580   :  { %1061 = vrcp.f32 %v884_v18 }
 0x581   :  { %v890_v21 = vadd.f32 %v888_v20, %v1427_v42  ;;  %v1022_v42 = vld [vmem:[%s1538_s14] ss:$0 sm:$0xff] }
 0x583   :  { %v895_v23 = vmul.f32 %v1021_v62, %v890_v21 }
 0x585   :  { %v900_v24 = vadd.f32 %v898_v22, %v895_v23 }
 0x586   :  { %v1062_v26 = vpop.eup %1061 }
 0x587   :  { %v889_v32 = vmul.f32 %v1062_v26, %v860_v37  ;;  %v902_v33 = vadd.f32 %v900_v24, %v1410_v9 }
 0x589   :  { %v891_v34 = vadd.f32 %v889_v32, %v1425_v45  ;;  %1004 = vmatmul.msk.f32.vlgmr.msra.gmra.mxu2 %vm149_vm1, %v902_v33 }
 0x58b   :  { %v896_v27 = vmul.f32 %v1021_v62, %v891_v34 }
 0x58d   :  { %v901_v12 = vadd.f32 %v898_v22, %v896_v27 }
 0x58f   :  { %v903_v43 = vadd.f32 %v901_v12, %v1418_v28 }
 0x591   :  { %1005 = vmatmul.msk.f32.gmra.mxu2 %vm149_vm1, %v903_v43 }
 0x60c   :  { %v935_v14 = vpop.f32.mrf.mxu2 }
 0x60d   :  { %v936_v25 = vadd.f32 %v1022_v42, %v935_v14 }
 0x60f   :  { %941 = vst.msk [vmem:[%s1540_s15] sm:$0xff] %vm65_vm0, %v936_v25 }
 0x614   :  { %v938_v9 = vpop.f32.mrf.mxu2 }
 0x615   :  { %v939_v45 = vadd.f32 %v1022_v42, %v938_v9 }
 0x617   :  { %942 = vst.msk [vmem:[%s1540_s15 + $0x8] sm:$0xff] %vm65_vm0, %v939_v45 }

</bundles_post_ra>
